<compile_context>
chip_gen: v5e
topology: v5e:2x2
jax: 0.10.0
libtpu: 0.0.40
codegen_flags: <defaults>
</compile_context>

<pallas_src>
import jax
import jax.numpy as jnp
from jax.experimental import pallas as pl
from jax.experimental.pallas import tpu as pltpu


# ----------------------------------------------------------------------------
# Fused kernel: LayerNorm + (pre-folded) adaLN modulate + final Linear.
# Grid: (B, num_token_tiles); both axes independent -> both "parallel".
# ----------------------------------------------------------------------------
def final_kernel(x_ref, aff_ref, wlin_ref, blin_ref, out_ref):
    x = x_ref[0]                                   # (tt, H), native dtype
    x32 = x.astype(jnp.float32)

    # One-pass LayerNorm statistics in fp32 (eps = 1e-6, biased variance).
    mean = jnp.mean(x32, axis=-1, keepdims=True)
    mean_sq = jnp.mean(x32 * x32, axis=-1, keepdims=True)
    var = mean_sq - mean * mean
    inv = jax.lax.rsqrt(var + 1e-6)

    # Pre-folded affine: aff[0] = ln_w*(1+scale), aff[1] = ln_b*(1+scale)+shift.
    aff = aff_ref[0]                               # (2, H) fp32
    xm = (x32 - mean) * (inv * aff[0:1, :]) + aff[1:2, :]   # LN + modulate, one FMA chain

    # Final Linear: native-dtype operands on the MXU, fp32 accumulation; weight is
    # already (H, out_dim) so no in-kernel transpose; bias is already fp32.
    y = jnp.dot(xm.astype(x.dtype), wlin_ref[...],
                preferred_element_type=jnp.float32)          # (tt, out_dim)
    out_ref[0] = (y + blin_ref[...]).astype(out_ref.dtype)


def _choose_token_tile(T, cap=512):
    """Largest token tile <= cap whose rows are a multiple of 8 (or the whole seq)."""
    if T <= cap:
        return T, 1
    best = 0
    for tt in range(8, cap + 1, 8):
        if T % tt == 0:
            best = tt
    if best:
        return best, T // best
    # No clean multiple-of-8 divisor: cdiv grid; the boundary block's out-of-range
    # rows are masked on writeback (all per-token ops, so garbage stays confined).
    return cap, pl.cdiv(T, cap)


# ----------------------------------------------------------------------------
# One-time parameter prep — run at load/donation time, NOT per forward call.
# ----------------------------------------------------------------------------
def prepare_final_layer_params(params):
    return {
        "w_lin_t": params["w_lin"].T,                                   # (H, out_dim)
        "b_lin_f32": params["b_lin"].astype(jnp.float32)[None, :],      # (1, out_dim)
        "w_ada_t": params["w_ada"].T,                                   # (C, 2H)
        "b_ada": params["b_ada"],                                       # (2H,)
        "ln_w_f32": params["ln_w"].astype(jnp.float32),                 # (H,)
        "ln_b_f32": params["ln_b"].astype(jnp.float32),                 # (H,)
    }


def final_layer_forward(x, c, prepped):
    B, T, H = x.shape
    w_lin_t = prepped["w_lin_t"]
    out_dim = w_lin_t.shape[1]

    # adaLN modulation (FP32_SiLU + tiny (B,C)x(C,2H) GEMM) folded with the LayerNorm
    # affine, done wrapper-side so the kernel carries no per-batch scratch state.
    c32 = c.astype(jnp.float32)
    s = (c32 * jax.nn.sigmoid(c32)).astype(c.dtype)                     # FP32_SiLU
    mod = (jnp.dot(s, prepped["w_ada_t"], preferred_element_type=jnp.float32)
           + prepped["b_ada"].astype(jnp.float32))                      # (B, 2H)
    shift, scale = mod[:, :H], mod[:, H:]
    one_plus = 1.0 + scale
    aff = jnp.stack([prepped["ln_w_f32"] * one_plus,
                     prepped["ln_b_f32"] * one_plus + shift], axis=1)   # (B, 2, H) f32

    tt, nT = _choose_token_tile(T)
    dsz = x.dtype.itemsize
    cost = pl.CostEstimate(
        flops=2 * B * T * H * out_dim,
        transcendentals=B * T,                                          # rsqrt per token
        bytes_accessed=(B * T * H * dsz                                 # x
                        + B * T * out_dim * dsz                         # out (unpadded)
                        + H * out_dim * w_lin_t.dtype.itemsize          # w_lin
                        + B * 2 * H * 4),                               # folded affine
    )

    return pl.pallas_call(
        final_kernel,
        out_shape=jax.ShapeDtypeStruct((B, T, out_dim), x.dtype),
        grid_spec=pltpu.PrefetchScalarGridSpec(
            num_scalar_prefetch=0,
            grid=(B, nT),
            in_specs=[
                pl.BlockSpec((1, tt, H), lambda b, j: (b, j, 0)),       # x tokens
                pl.BlockSpec((1, 2, H), lambda b, j: (b, 0, 0)),        # folded affine
                pl.BlockSpec((H, out_dim), lambda b, j: (0, 0)),        # w_lin^T
                pl.BlockSpec((1, out_dim), lambda b, j: (0, 0)),        # b_lin (fp32)
            ],
            out_specs=pl.BlockSpec((1, tt, out_dim), lambda b, j: (b, j, 0)),
        ),
        compiler_params=pltpu.CompilerParams(
            dimension_semantics=("parallel", "parallel")),
        cost_estimate=cost,
    )(x, aff, w_lin_t, prepped["b_lin_f32"])


# ----------------------------------------------------------------------------
# Params + pure-JAX reference
# ----------------------------------------------------------------------------
def init_params(key, final_hidden_size, c_emb_size, patch_size, out_channels,
                dtype=jnp.float32):
    H = final_hidden_size
    out_dim = patch_size * patch_size * out_channels
    ks = jax.random.split(key, 4)
    return {
        # nn.Linear(H, p*p*out_channels): weight (out, in), bias (out,)
        "w_lin": jax.random.normal(ks[0], (out_dim, H), dtype) * 0.02,
        "b_lin": jax.random.normal(ks[1], (out_dim,), dtype) * 0.02,
        # nn.Linear(c_emb_size, 2H)
        "w_ada": jax.random.normal(ks[2], (2 * H, c_emb_size), dtype) * 0.02,
        "b_ada": jax.random.normal(ks[3], (2 * H,), dtype) * 0.02,
        # nn.LayerNorm(H, elementwise_affine=True, eps=1e-6)
        "ln_w": jnp.ones((H,), dtype),
        "ln_b": jnp.zeros((H,), dtype),
    }


def reference_forward(x, c, params):
    c32 = c.astype(jnp.float32)
    s = (c32 * jax.nn.sigmoid(c32)).astype(c.dtype)
    mod = s @ params["w_ada"].T + params["b_ada"]
    H = x.shape[-1]
    shift, scale = mod[:, :H], mod[:, H:]
    mean = jnp.mean(x, axis=-1, keepdims=True)
    var = jnp.mean((x - mean) ** 2, axis=-1, keepdims=True)
    xn = (x - mean) / jnp.sqrt(var + 1e-6)
    xn = xn * params["ln_w"] + params["ln_b"]
    xm = xn * (1.0 + scale[:, None, :]) + shift[:, None, :]
    return xm @ params["w_lin"].T + params["b_lin"]


if __name__ == "__main__":
    # Small shapes consistent with the module.
    B, T = 2, 8
    final_hidden_size = 32
    c_emb_size = 16
    patch_size = 2
    out_channels = 4

    key = jax.random.PRNGKey(0)
    kx, kc, kp = jax.random.split(key, 3)
    x = jax.random.normal(kx, (B, T, final_hidden_size), jnp.float32)
    c = jax.random.normal(kc, (B, c_emb_size), jnp.float32)
    params = init_params(kp, final_hidden_size, c_emb_size, patch_size, out_channels)

    prepped = prepare_final_layer_params(params)   # one-time prep, hoisted out of the call path
    out = jax.block_until_ready(final_layer_forward(x, c, prepped))

    ref = reference_forward(x, c, params)
    assert out.shape == (B, T, patch_size * patch_size * out_channels)
    assert jnp.allclose(out, ref, atol=1e-4, rtol=1e-4), "mismatch vs reference"

    print("KERNEL_OK")
</pallas_src>

<mosaic_0001>
module attributes {stable_mosaic.version = 11 : i64} {
  func.func @final_kernel(%arg0: i32, %arg1: i32, %arg2: memref<1x8x32xf32, #tpu.memory_space<vmem>>, %arg3: memref<1x2x32xf32, #tpu.memory_space<vmem>>, %arg4: memref<32x16xf32, #tpu.memory_space<vmem>>, %arg5: memref<1x16xf32, #tpu.memory_space<vmem>>, %arg6: memref<1x8x16xf32, #tpu.memory_space<vmem>>) attributes {dimension_semantics = [#tpu.dimension_semantics<parallel>, #tpu.dimension_semantics<parallel>], iteration_bounds = array<i64: 2, 1>, scalar_prefetch = 0 : i64, scratch_operands = 0 : i64, tpu.core_type = #tpu.core_type<tc>, window_params = [{transform_indices = @transform_0, window_bounds = array<i64: 1, 8, 32>}, {transform_indices = @transform_1, window_bounds = array<i64: 1, 2, 32>}, {pipeline_mode = #tpu.pipeline_mode<synchronous>, transform_indices = @transform_2, window_bounds = array<i64: 32, 16>}, {pipeline_mode = #tpu.pipeline_mode<synchronous>, transform_indices = @transform_3, window_bounds = array<i64: 1, 16>}, {transform_indices = @transform_4, window_bounds = array<i64: 1, 8, 16>}]} {
    %c0 = arith.constant 0 : index
    %c0_0 = arith.constant 0 : index
    %c0_1 = arith.constant 0 : index
    %0 = vector.load %arg2[%c0, %c0_0, %c0_1] : memref<1x8x32xf32, #tpu.memory_space<vmem>>, vector<1x8x32xf32>
    %1 = vector.shape_cast %0 : vector<1x8x32xf32> to vector<8x32xf32>
    %cst = arith.constant dense<0.000000e+00> : vector<8xf32>
    %2 = vector.multi_reduction <add>, %1, %cst [1] : vector<8x32xf32> to vector<8xf32>
    %3 = vector.shape_cast %2 : vector<8xf32> to vector<8x1xf32>
    %cst_2 = arith.constant 3.200000e+01 : f32
    %4 = vector.broadcast %cst_2 : f32 to vector<8x1xf32>
    %5 = arith.divf %3, %4 : vector<8x1xf32>
    %6 = arith.mulf %1, %1 : vector<8x32xf32>
    %cst_3 = arith.constant dense<0.000000e+00> : vector<8xf32>
    %7 = vector.multi_reduction <add>, %6, %cst_3 [1] : vector<8x32xf32> to vector<8xf32>
    %8 = vector.shape_cast %7 : vector<8xf32> to vector<8x1xf32>
    %cst_4 = arith.constant 3.200000e+01 : f32
    %9 = vector.broadcast %cst_4 : f32 to vector<8x1xf32>
    %10 = arith.divf %8, %9 : vector<8x1xf32>
    %11 = arith.mulf %5, %5 : vector<8x1xf32>
    %12 = arith.subf %10, %11 : vector<8x1xf32>
    %cst_5 = arith.constant 9.99999997E-7 : f32
    %13 = vector.broadcast %cst_5 : f32 to vector<8x1xf32>
    %14 = arith.addf %12, %13 : vector<8x1xf32>
    %15 = math.rsqrt %14 : vector<8x1xf32>
    %c0_6 = arith.constant 0 : index
    %c0_7 = arith.constant 0 : index
    %c0_8 = arith.constant 0 : index
    %16 = vector.load %arg3[%c0_6, %c0_7, %c0_8] : memref<1x2x32xf32, #tpu.memory_space<vmem>>, vector<1x2x32xf32>
    %17 = vector.shape_cast %16 : vector<1x2x32xf32> to vector<2x32xf32>
    %18 = vector.broadcast %5 : vector<8x1xf32> to vector<8x32xf32>
    %19 = arith.subf %1, %18 : vector<8x32xf32>
    %20 = vector.extract_strided_slice %17 {offsets = [0, 0], sizes = [1, 32], strides = [1, 1]} : vector<2x32xf32> to vector<1x32xf32>
    %21 = vector.broadcast %15 : vector<8x1xf32> to vector<8x32xf32>
    %22 = vector.broadcast %20 : vector<1x32xf32> to vector<8x32xf32>
    %23 = arith.mulf %21, %22 : vector<8x32xf32>
    %24 = arith.mulf %19, %23 : vector<8x32xf32>
    %25 = vector.extract_strided_slice %17 {offsets = [1, 0], sizes = [1, 32], strides = [1, 1]} : vector<2x32xf32> to vector<1x32xf32>
    %26 = vector.broadcast %25 : vector<1x32xf32> to vector<8x32xf32>
    %27 = arith.addf %24, %26 : vector<8x32xf32>
    %c0_9 = arith.constant 0 : index
    %c0_10 = arith.constant 0 : index
    %28 = vector.load %arg4[%c0_9, %c0_10] : memref<32x16xf32, #tpu.memory_space<vmem>>, vector<32x16xf32>
    %cst_11 = arith.constant dense<0.000000e+00> : vector<8x16xf32>
    %29 = tpu.matmul %27, %28, %cst_11 {dimension_numbers = #tpu.dot_dimension_numbers<[1], [0], [0], [1], [0, 0, 1, 1], [], []>} : vector<8x32xf32>, vector<32x16xf32>, vector<8x16xf32> -> vector<8x16xf32>
    %c0_12 = arith.constant 0 : index
    %c0_13 = arith.constant 0 : index
    %30 = vector.load %arg5[%c0_12, %c0_13] : memref<1x16xf32, #tpu.memory_space<vmem>>, vector<1x16xf32>
    %31 = vector.broadcast %30 : vector<1x16xf32> to vector<8x16xf32>
    %32 = arith.addf %29, %31 : vector<8x16xf32>
    %c0_14 = arith.constant 0 : index
    %c0_15 = arith.constant 0 : index
    %c0_16 = arith.constant 0 : index
    %33 = vector.load %arg6[%c0_14, %c0_15, %c0_16] : memref<1x8x16xf32, #tpu.memory_space<vmem>>, vector<1x8x16xf32>
    %34 = vector.shape_cast %33 : vector<1x8x16xf32> to vector<8x16xf32>
    %35 = vector.shape_cast %32 : vector<8x16xf32> to vector<1x8x16xf32>
    tpu.vector_store %arg6[%c0_14, %c0_15, %c0_16], %35 {strides = array<i32>} : memref<1x8x16xf32, #tpu.memory_space<vmem>>, vector<1x8x16xf32>,
    return
  }
  func.func @transform_0(%arg0: i32, %arg1: i32) -> (i32, i32, i32) {
    %c0_i32 = arith.constant 0 : i32
    %c0_i32_0 = arith.constant 0 : i32
    return %arg0, %arg1, %c0_i32 : i32, i32, i32
  }
  func.func @transform_1(%arg0: i32, %arg1: i32) -> (i32, i32, i32) {
    %c0_i32 = arith.constant 0 : i32
    %c0_i32_0 = arith.constant 0 : i32
    %c0_i32_1 = arith.constant 0 : i32
    return %arg0, %c0_i32, %c0_i32_0 : i32, i32, i32
  }
  func.func @transform_2(%arg0: i32, %arg1: i32) -> (i32, i32) {
    %c0_i32 = arith.constant 0 : i32
    %c0_i32_0 = arith.constant 0 : i32
    %c0_i32_1 = arith.constant 0 : i32
    return %c0_i32, %c0_i32_0 : i32, i32
  }
  func.func @transform_3(%arg0: i32, %arg1: i32) -> (i32, i32) {
    %c0_i32 = arith.constant 0 : i32
    %c0_i32_0 = arith.constant 0 : i32
    %c0_i32_1 = arith.constant 0 : i32
    return %c0_i32, %c0_i32_0 : i32, i32
  }
  func.func @transform_4(%arg0: i32, %arg1: i32) -> (i32, i32, i32) {
    %c0_i32 = arith.constant 0 : i32
    %c0_i32_0 = arith.constant 0 : i32
    return %arg0, %arg1, %c0_i32 : i32, i32, i32
  }
}

</mosaic_0001>

<bundles_post_ra>
// kernel: tpu_custom_call.1
= control target key start
LH: loop header
LB: loop body
LE: loop exit
PB: predicated region body
PF: predicated region fallthrough
CT: control target
= control target key end

     0   :  { %9 = vsyncpa [#allocation3], 0  ;;  %s708_s0 = inlined_call_operand.vmem [shape: f32[2,8,32], index: 0, kind: input, shape index: {}]   ;;  %s709_s1 = inlined_call_operand.vmem [shape: f32[2,2,32], index: 1, kind: input, shape index: {}]   ;;  %s710_s2 = inlined_call_operand.vmem [shape: f32[32,16], index: 2, kind: input, shape index: {}]   ;;  %s711_s3 = inlined_call_operand.vmem [shape: f32[1,16], index: 3, kind: input, shape index: {}]   ;;  %s712_s4 = inlined_call_operand.hbm [shape: f32[2,8,16], index: 4, kind: output, shape index: {}]  }
   0x1   :  { %11 = vsyncpa [#allocation3 + $0x1], 0  ;;  %s586_s15 = smov 0   ;;  %s588_s16 = smov 0  }
   0x2   :  { %s590_s17 = smov 0   ;;  %s592_s18 = smov 0  }
   0x3   :  { %s594_s19 = smov 0   ;;  %s596_s20 = smov 0  }
   0x4 LB: > { %s406_s21 = sadd.s32 4294967295, %s558_s20   ;;  %s407_s22 = sadd.s32 4294967294, %s558_s20   ;;  %s558_s20 = sphi %s596_s20, %s17_s20   ;;  %s554_s19 = sphi %s594_s19, %s719_s19   ;;  %s550_s18 = sphi %s592_s18, %s718_s18   ;;  %s546_s17 = sphi %s590_s17, %s717_s17   ;;  %s542_s16 = sphi %s588_s16, %s716_s16   ;;  %s538_s15 = sphi %s586_s15, %s715_s15  }
   0x5   : > { %s29_s23 = sadd.s32 1, %s554_s19  ;;  %s134_s24 = sadd.s32 1, %s546_s17 }
   0x6   : > { %p31_p0 = scmp.ge.s32.totalorder %s29_s23, 2  ;;  %p144_p1 = scmp.ne.s32.totalorder %s546_s17, %s542_s16 }
   0x7   : > { %p145_p2 = scmp.eq.s32.totalorder %s406_s21, 1  ;;  %p150_p3 = scmp.ne.s32.totalorder %s542_s16, %s538_s15 }
   0x8   : > { %s721_s23 = smov (%p31_p0, %s29_s23), 0  ;;  %p151_p5 = scmp.eq.s32.totalorder %s407_s22, 1 }
   0x9   : > { %p626_p4 = por %p145_p2, %p144_p1  ;;  %s129_s26 = ssub.s32 %s554_s19, %s721_s23 }
   0xa   : > { %p410_p6 = scmp.ge.s32.totalorder %s558_s20, 1  ;;  %p132_p7 = scmp.eq.s32.totalorder %s129_s26, 0 }
   0xb   : > { %p633_p8 = por %p151_p5, %p150_p3  ;;  %p192_p9 = scmp.lt.s32.totalorder %s558_s20, 3 }
   0xc   : > { %s639_s28 = scalar_select %p132_p7, %s546_s17, %s134_s24  }
   0xd   : > { %p193_p10 = pnand %p410_p6, %p192_p9 }
   0xe   : > { %p224_p11 = scmp.lt.s32.totalorder (!%p193_p10), %s550_s18, 1  ;;  %s416_s6 = sshll.u32 (!%p193_p10), %s550_s18, 3 }
   0xf   : > { %196 = sbr.rel (%p193_p10) target bundleno = 311 (0x137), region = 36  ;;  %s318_s9 = scalar_lea.hbm (!%p193_p10), %s712_s4, %s416_s6 }
  0x10   : > { %s322_s14 = sshll.u32 (!%p193_p10), %s318_s9, 4  ;;  %s323_s14 = int_to_ptr.hbm [resolvable:$true] %s322_s14 }
  0x14   : > { %s643_s29 = scalar_select %p224_p11, %s550_s18, 1  ;;  %vm236_vm0 = vcmask 261120   ;;  %v560_v4 = vmov 32.0   ;;  %v276_v10 = vld [vmem:[%s710_s2 + $0x18] sm:$0xff]  ;;  %v275_v11 = vld [vmem:[%s710_s2 + $0x10] sm:$0xff]  ;;  %v274_v13 = vld [vmem:[%s710_s2 + $0x8] sm:$0xff] }
  0x15   : > { %476 = vrcp.f32 %v560_v4  ;;  %296 = vmatpush.msra.mxu0 %v276_v10  ;;  %v273_v15 = vld [vmem:[%s710_s2] sm:$0xff]  ;;  %vm304_vm5 = vcmask 130048   ;;  %s494_s18 = sshra.s32 %s323_s14, 4  ;;  %s495_s18 = int_to_ptr.hbm [resolvable:$true] %s494_s18 }
  0x16   : > { %s412_s30 = sshll.u32 %s643_s29, 3  ;;  %s413_s22 = sshll.u32 %s643_s29, 1  ;;  %v475_v36 = vld [vmem:[%s711_s3] ss:$0 sm:$0xff] }
  0x17   : > { %s230_s7 = scalar_lea.vmem %s708_s0, %s412_s30  ;;  %297 = vmatpush.msra.mxu0 %v275_v11  ;;  %s234_s30 = scalar_lea.vmem %s709_s1, %s413_s22 }
  0x18   : > { %v235_v0 = vld [vmem:[%s230_s7] sm:$0xff]  ;;  %s221_s29 = sand.u32 1, %s542_s16   ;;  %s496_s22 = scalar_lea.hbm %s495_s18, 8 }
  0x19   : > { %v237_v1 = vsel %vm236_vm0, %v235_v0, 0.0  ;;  %v248_v2 = vmul.f32 %v235_v0, %v235_v0  ;;  %298 = vmatpush.msra.mxu0 %v274_v13  ;;  %v266_v26 = vld [vmem:[%s234_s30] sm:$0x3]  ;;  %s411_s5 = sshll.u32 %s221_s29, 3  ;;  %s307_s21 = scalar_lea.sflag [#allocation3], %s221_s29 }
  0x1a   : > { %238 = vadd.xlane.f32.xlu0 %v237_v1  ;;  %v268_v28 = vperm.slane %v266_v26, 0  ;;  %v271_v33 = vperm.slane %v266_v26, 1  ;;  %s223_s12 = scalar_lea.vmem [#allocation2], %s411_s5  ;;  %p497_p12 = scmp.ne.s32.totalorder %s495_s18, %s496_s22 }
  0x1b   : > { %v249_v3 = vsel %vm236_vm0, %v248_v2, 0.0  ;;  %v477_v5 = vpop.eup %476  ;;  %299 = vmatpush.msra.mxu0 %v273_v15  ;;  %s320_s13 = sshll.u32 %s223_s12, 4  ;;  %s500_s30 = scalar_lea.hbm %s712_s4, 16  ;;  %s321_s13 = int_to_ptr.vmem [resolvable:$true] %s320_s13 }
  0x1c   : > { %v241_v6 = vmul.f32 32.0, %v477_v5  ;;  %vm245_vm1 = vweird.f32 %v477_v5  ;;  %p498_p13 = pnand %p497_p12, %p626_p4  ;;  %p501_p1 = scmp.lt.s32.totalorder %s495_s18, %s712_s4 }
  0x1d   : > { %p502_p2 = scmp.lt.s32.totalorder %s500_s30, %s496_s22 }
  0x1e   : > { %v242_v7 = vsub.f32 1.0, %v241_v6  ;;  %p499_p0 = pneg %p498_p13 }
  0x1f   : > { %p503_p3 = por %p502_p2, %p501_p1 }
  0x20   : > { %v243_v8 = vmul.f32 %v477_v5, %v242_v7 }
  0x21   : > { %p504_p5 = pnand %p503_p3, %p499_p0 }
  0x22   : > { %250 = vadd.xlane.f32.xlu0 %v249_v3  ;;  %v244_v9 = vadd.f32 %v477_v5, %v243_v8 }
  0x24   : > { %v246_v14 = vsel %vm245_vm1, %v477_v5, %v244_v9 }
  0x8d   : > { %v239_v12 = vpop.xlane.xlu0 %238 }
  0x8e   : > { %v247_v16 = vmul.f32 %v246_v14, %v239_v12 }
  0x90   : > { %v253_v18 = vmul.f32 %v247_v16, %v247_v16  ;;  %v267_v31 = vsub.f32 %v235_v0, %v247_v16 }
  0x95   : > { %v251_v17 = vpop.xlane.xlu0 %250 }
  0x96   : > { %v252_v19 = vmul.f32 %v251_v17, %v246_v14 }
  0x98   : > { %v254_v20 = vsub.f32 %v252_v19, %v253_v18 }
  0x9a   : > { %v255_v21 = vadd.f32 1e-06, %v254_v20 }
  0x9c   : > { %478 = vrsqrt.f32 %v255_v21  ;;  %vm262_vm3 = vweird.f32 %v255_v21 }
  0xa2   : > { %v479_v22 = vpop.eup %478 }
  0xa3   : > { %v257_v23 = vmul.f32 %v479_v22, %v255_v21  ;;  %vm263_vm2 = vweird.f32 %v479_v22 }
  0xa4   : > { %vm264_vm4 = vmor %vm262_vm3, %vm263_vm2 }
  0xa5   : > { %v258_v24 = vmul.f32 %v479_v22, %v257_v23 }
  0xa7   : > { %v259_v25 = vmul.f32 0.5, %v258_v24 }
  0xa9   : > { %v260_v27 = vsub.f32 1.5, %v259_v25 }
  0xab   : > { %v261_v29 = vmul.f32 %v479_v22, %v260_v27 }
  0xad   : > { %v265_v30 = vsel %vm264_vm4, %v479_v22, %v261_v29 }
  0xae   : > { %v269_v32 = vmul.f32 %v268_v28, %v265_v30 }
  0xb0   : > { %v270_v34 = vmul.f32 %v269_v32, %v267_v31 }
  0xb2   : > { %v272_v35 = vadd.f32 %v271_v33, %v270_v34 }
  0xb4   : > { %414 = vmatmul.msk.f32.vlgmr.msra.gmra.mxu0 %vm236_vm0, %v272_v35 }
 0x131   : > { %v301_v37 = vpop.f32.mrf.mxu0 }
 0x132   : > { %v302_v38 = vadd.f32 %v475_v36, %v301_v37 }
 0x134   : > { %305 = vst.msk [vmem:[%s223_s12] sm:$0xff] %vm304_vm5, %v302_v38 }
 0x135   : > { %507 = shalt.err (!%p504_p5)
}
 0x136   : > { %419 = dma.vmem_to_hbm [thread:$0]  (%p626_p4), %s321_s13, 128, %s323_s14, %s307_s21  }
 0x137 PF: > { %p425_p6 = scmp.ge.s32.totalorder %s558_s20, 2  ;;  %s334_s29 = sand.u32 1, %s538_s15  }
 0x138   : > { %s335_s7 = scalar_lea.sflag [#allocation3], %s334_s29 }
 0x139   : > { %p422_p7 = pnand %p425_p6, %p633_p8 }
 0x13b   : > { %p423_p9 = pneg %p422_p7 }
 0x13d   : > { %533 = dma.done.wait (%p423_p9), %s335_s7, 128  }
 0x13e   : > { %535 = vsyncadd (%p423_p9), %s335_s7, 4294967168  ;;  %s17_s20 = sadd.s32 1, %s558_s20   ;;  %s715_s15 = smov %s542_s16 }
 0x13f   : > { %p14_p10 = scmp.ge.s32.totalorder %s17_s20, 4   ;;  %s716_s16 = smov %s546_s17 }
 0x140   : > { %s717_s17 = smov %s639_s28  ;;  %s718_s18 = smov %s554_s19 }
 0x141   : > { %s719_s19 = smov %s721_s23  ;;  %16 = sbr.rel (!%p14_p10) target bundleno = 4 (0x4), region = 74 }
 0x146   :  { %341 = vsyncpa [#allocation3], 1 }
 0x147   :  { %343 = vsyncpa [#allocation3 + $0x1], 1 }

</bundles_post_ra>
